<compile_context>
chip_gen: v7x
topology: tpu7x:2x2x1
jax: 0.10.0
libtpu: 0.0.40
codegen_flags: <defaults>
</compile_context>

<pallas_src>
import jax
import jax.numpy as jnp
from jax.experimental import pallas as pl
from jax.experimental.pallas import tpu as pltpu


_MAX_BATCH_TILE = 1024        # absolute sanity cap on rows per block


def _vmem_capacity_bytes():
    try:
        return int(pltpu.get_tpu_info().vmem_capacity_bytes)
    except Exception:
        return 64 << 20       # conservative fallback (v7x per-TC VMEM)


def _choose_batch_tile(n, l, h, block_budget):
    """Pick (n_padded, tn).

    tn is a multiple of 8 dividing n_padded (or == n for tiny batches, where a full-extent
    block is exempt from the 8-sublane rule), capped by the VMEM block budget, and chosen so
    the grid has >= 4 steps whenever the batch allows (pipelining + 2-TC sharding on v7x).
    """
    row_work = l * h * 4                        # f32 working bytes per batch row in-kernel
    if n <= 8:
        return n, n                             # single full block; nothing to pipeline
    n_pad = -(-n // 8) * 8
    tn_cap = max(8, min(_MAX_BATCH_TILE, (block_budget // row_work) // 8 * 8))
    cands = [t for t in range(8, min(n_pad, tn_cap) + 1, 8) if n_pad % t == 0]
    if not cands:
        return n_pad, 8                         # unreachable: 8 always divides n_pad
    pipelined = [t for t in cands if n_pad // t >= 4]
    return n_pad, (max(pipelined) if pipelined else min(cands))


def _vmem_limit_bytes(block_work_bytes, capacity):
    # ~2x double-buffered x + f32 upcast + elementwise temporaries + internal scratch,
    # with margin, but never more than ~60% of physical VMEM (<= ~40 MiB on v7x).
    want = 10 * block_work_bytes + (4 << 20)
    return int(max(24 << 20, min(want, (capacity * 3) // 5)))


def _pool_block(x, w, b, mask):
    """Per-block compute. x:(TN,L,H) f32/bf16, w:(1,1,H) f32, b scalar f32, mask:(TN,L) {0,1} f32."""
    xf = x.astype(jnp.float32)                                   # shared f32 view (PV needs f32)

    # 1x1 conv over channels == per-position dot with w, plus bias.  Fused VPU multiply into
    # the streaming tile + lane reduction; the MXU form would have M=1 per row (full weight
    # reload per row, zero reuse) and would also land scores on the sublane axis.
    scores = jnp.sum(xf * w, axis=-1) + b                        # (TN, L) f32

    # masked_fill_(mask == 0, -inf); fully-masked rows give NaN, matching PyTorch semantics.
    scores = jnp.where(mask > 0.0, scores, -jnp.inf)

    # Numerically stable softmax over the length (lane) axis; reciprocal on the EUP slot.
    m = jnp.max(scores, axis=-1, keepdims=True)                  # (TN, 1)
    e = jnp.exp(scores - m)                                      # (TN, L)
    attn = e * pl.reciprocal(jnp.sum(e, axis=-1, keepdims=True), approx=False)   # (TN, L) f32

    # Attention pooling on the VPU/XLU: lane-broadcast attn over H, f32 accumulate over L
    # (sublane reduce).  No MXU weight reloads, attn stays full f32, f32 inputs stay exact.
    out = jnp.sum(xf * attn[:, :, None], axis=1)                 # (TN, H) f32
    return out, attn


def _kernel_with_attn(x_ref, w_ref, mask_ref, b_ref, out_ref, attn_ref):
    out, attn = _pool_block(x_ref[...], w_ref[...], b_ref[0], mask_ref[...])
    out_ref[...] = out.astype(out_ref.dtype)
    attn_ref[...] = attn


def _kernel_no_attn(x_ref, w_ref, mask_ref, b_ref, out_ref):
    out, _ = _pool_block(x_ref[...], w_ref[...], b_ref[0], mask_ref[...])
    out_ref[...] = out.astype(out_ref.dtype)


def attention1d_pooling(x, w, b, input_mask=None, return_attn=True, batch_tile=None):
    """x: (N, L, H); w: (H,) conv weight; b: scalar conv bias; input_mask: (N, L)-like or None.

    Returns (out, attn) with out:(N, H) in x.dtype and attn:(N, L, 1) f32, or just out.
    """
    n, l, h = x.shape
    orig_n = n

    # Binarize the mask with PyTorch masked_fill_ semantics: any nonzero value keeps the position.
    if input_mask is None:
        mask = jnp.ones((n, l), dtype=jnp.float32)
    else:
        mask = (input_mask.reshape(n, l) != 0).astype(jnp.float32)

    capacity = _vmem_capacity_bytes()
    block_budget = (4 << 20) if capacity <= (64 << 20) else (8 << 20)

    if batch_tile is not None:
        n_pad, tn = n, int(batch_tile)
        assert n % tn == 0 and (tn % 8 == 0 or tn == n), (n, tn)
    else:
        n_pad, tn = _choose_batch_tile(n, l, h, block_budget)

    if n_pad != n:
        # Pad the batch so tiles are multiples of 8 sublanes.  Pad rows (x=0, mask=1) compute a
        # harmless uniform softmax / zero output and are sliced off below.
        x = jnp.pad(x, ((0, n_pad - n), (0, 0), (0, 0)))
        mask = jnp.pad(mask, ((0, n_pad - n), (0, 0)), constant_values=1.0)

    w3 = jnp.asarray(w, jnp.float32).reshape(1, 1, h)
    b1 = jnp.asarray(b, jnp.float32).reshape(1)

    grid = (n_pad // tn,)
    block_work = tn * l * h * 4
    vmem_limit = _vmem_limit_bytes(block_work, capacity)

    in_specs = [
        pl.BlockSpec((tn, l, h), lambda i: (i, 0, 0)),            # x: streamed batch tiles
        pl.BlockSpec((1, 1, h), lambda i: (0, 0, 0)),             # w: tiny, resident
        pl.BlockSpec((tn, l), lambda i: (i, 0)),                  # mask
        pl.BlockSpec(memory_space=pltpu.MemorySpace.SMEM),        # bias scalar in SMEM
    ]
    out_spec = pl.BlockSpec((tn, h), lambda i: (i, 0))
    attn_spec = pl.BlockSpec((tn, l), lambda i: (i, 0))           # lane-dense attn writeback

    compiler_params = pltpu.CompilerParams(
        dimension_semantics=("parallel",),                        # v7x: shard across both TCs
        vmem_limit_bytes=vmem_limit,
    )
    itemsize = x.dtype.itemsize
    cost = pl.CostEstimate(
        flops=4 * n_pad * l * h,                                  # score mul+add, PV mul+add
        transcendentals=n_pad * l,                                # exp
        bytes_accessed=(n_pad * l * h * itemsize                  # x read (dominant stream)
                        + n_pad * l * 4                           # mask read
                        + n_pad * h * itemsize                    # out write
                        + (n_pad * l * 4 if return_attn else 0)   # attn write
                        + h * 4),
    )

    if return_attn:
        out, attn = pl.pallas_call(
            _kernel_with_attn,
            grid=grid,
            in_specs=in_specs,
            out_specs=(out_spec, attn_spec),
            out_shape=(
                jax.ShapeDtypeStruct((n_pad, h), x.dtype),
                jax.ShapeDtypeStruct((n_pad, l), jnp.float32),
            ),
            compiler_params=compiler_params,
            cost_estimate=cost,
        )(x, w3, mask, b1)
        if n_pad != orig_n:
            out, attn = out[:orig_n], attn[:orig_n]
        return out, attn.reshape(orig_n, l, 1)    # PyTorch returns attn as (N, L, 1)

    out = pl.pallas_call(
        _kernel_no_attn,
        grid=grid,
        in_specs=in_specs,
        out_specs=out_spec,
        out_shape=jax.ShapeDtypeStruct((n_pad, h), x.dtype),
        compiler_params=compiler_params,
        cost_estimate=cost,
    )(x, w3, mask, b1)
    if n_pad != orig_n:
        out = out[:orig_n]
    return out


def _reference(x, w, b, input_mask=None):
    """Pure-JAX reference mirroring the PyTorch forward (f32 math)."""
    n, l, h = x.shape
    xf = x.astype(jnp.float32)
    scores = jnp.einsum("nlh,h->nl", xf, jnp.asarray(w, jnp.float32)) + b
    if input_mask is not None:
        scores = jnp.where(input_mask.reshape(n, l) != 0, scores, -jnp.inf)
    attn = jax.nn.softmax(scores, axis=-1)
    out = jnp.einsum("nl,nlh->nh", attn, xf)
    return out, attn.reshape(n, l, 1)


if __name__ == "__main__":
    # Small shapes consistent with the module: batch=2, seq_len=16, hidden=32.
    n, l, h = 2, 16, 32
    key = jax.random.PRNGKey(0)
    kx, kw, kb, km = jax.random.split(key, 4)

    x = jax.random.normal(kx, (n, l, h), dtype=jnp.float32)
    w = jax.random.normal(kw, (h,), dtype=jnp.float32) * 0.1       # Conv1d(H,1,1).weight
    b = jax.random.normal(kb, (), dtype=jnp.float32) * 0.1         # Conv1d(H,1,1).bias
    input_mask = (jax.random.uniform(km, (n, l)) > 0.25).astype(jnp.float32)
    input_mask = input_mask.at[:, 0].set(1.0)                      # keep every row non-empty

    out, attn = attention1d_pooling(x, w, b, input_mask=input_mask, return_attn=True)
    jax.block_until_ready((out, attn))
    out_ref, attn_ref = _reference(x, w, b, input_mask)
    assert out.shape == (n, h) and attn.shape == (n, l, 1)
    assert jnp.allclose(out, out_ref, atol=1e-5, rtol=1e-5)
    assert jnp.allclose(attn, attn_ref, atol=1e-5, rtol=1e-5)

    # No-mask path.
    out_nm, attn_nm = attention1d_pooling(x, w, b, input_mask=None, return_attn=True)
    out_nm_ref, attn_nm_ref = _reference(x, w, b, None)
    assert jnp.allclose(out_nm, out_nm_ref, atol=1e-5, rtol=1e-5)
    assert jnp.allclose(attn_nm, attn_nm_ref, atol=1e-5, rtol=1e-5)

    # return_attn=False variant (skips the attn writeback entirely).
    out_only = attention1d_pooling(x, w, b, input_mask=input_mask, return_attn=False)
    jax.block_until_ready(out_only)
    assert jnp.allclose(out_only, out_ref, atol=1e-5, rtol=1e-5)

    # bf16 input passthrough (halves the dominant HBM stream on real shapes).
    out_bf, attn_bf = attention1d_pooling(
        x.astype(jnp.bfloat16), w, b, input_mask=input_mask, return_attn=True)
    jax.block_until_ready((out_bf, attn_bf))
    assert out_bf.dtype == jnp.bfloat16
    assert jnp.allclose(out_bf.astype(jnp.float32), out_ref, atol=3e-2, rtol=3e-2)

    # Larger shape that exercises the batch grid (2 tiles of 8 rows each).
    n2, l2, h2 = 16, 128, 256
    kx2, km2, kw2 = jax.random.split(jax.random.PRNGKey(1), 3)
    x2 = jax.random.normal(kx2, (n2, l2, h2), dtype=jnp.float32)
    w2 = jax.random.normal(kw2, (h2,), dtype=jnp.float32) * 0.05
    mask2 = (jax.random.uniform(km2, (n2, l2)) > 0.3).astype(jnp.float32)
    mask2 = mask2.at[:, 0].set(1.0)
    out2, attn2 = attention1d_pooling(x2, w2, b, input_mask=mask2, return_attn=True,
                                      batch_tile=8)
    jax.block_until_ready((out2, attn2))
    out2_ref, attn2_ref = _reference(x2, w2, b, mask2)
    assert jnp.allclose(out2, out2_ref, atol=1e-4, rtol=1e-4)
    assert jnp.allclose(attn2, attn2_ref, atol=1e-5, rtol=1e-4)

    # Awkward batch size (no multiple-of-8 divisor) exercises the padding path.
    n3, l3, h3 = 10, 64, 128
    kx3, km3, kw3 = jax.random.split(jax.random.PRNGKey(2), 3)
    x3 = jax.random.normal(kx3, (n3, l3, h3), dtype=jnp.float32)
    w3_ = jax.random.normal(kw3, (h3,), dtype=jnp.float32) * 0.05
    mask3 = (jax.random.uniform(km3, (n3, l3)) > 0.3).astype(jnp.float32)
    mask3 = mask3.at[:, 0].set(1.0)
    out3, attn3 = attention1d_pooling(x3, w3_, b, input_mask=mask3, return_attn=True)
    jax.block_until_ready((out3, attn3))
    out3_ref, attn3_ref = _reference(x3, w3_, b, mask3)
    assert out3.shape == (n3, h3) and attn3.shape == (n3, l3, 1)
    assert jnp.allclose(out3, out3_ref, atol=1e-4, rtol=1e-4)
    assert jnp.allclose(attn3, attn3_ref, atol=1e-5, rtol=1e-4)

    print("KERNEL_OK")
</pallas_src>

<mosaic_0001>
module attributes {stable_mosaic.version = 11 : i64} {
  func.func @_kernel_with_attn(%arg0: i32, %arg1: memref<2x16x32xf32, #tpu.memory_space<vmem>>, %arg2: memref<1x1x32xf32, #tpu.memory_space<vmem>>, %arg3: memref<2x16xf32, #tpu.memory_space<vmem>>, %arg4: memref<1xf32, #tpu.memory_space<smem>>, %arg5: memref<2x32xf32, #tpu.memory_space<vmem>>, %arg6: memref<2x16xf32, #tpu.memory_space<vmem>>) attributes {dimension_semantics = [#tpu.dimension_semantics<parallel>], iteration_bounds = array<i64: 1>, scalar_prefetch = 0 : i64, scratch_operands = 0 : i64, tpu.core_type = #tpu.core_type<tc>, window_params = [{transform_indices = @transform_0, window_bounds = array<i64: 2, 16, 32>}, {pipeline_mode = #tpu.pipeline_mode<synchronous>, transform_indices = @transform_1, window_bounds = array<i64: 1, 1, 32>}, {transform_indices = @transform_2, window_bounds = array<i64: 2, 16>}, {transform_indices = @transform_3, window_bounds = array<i64: 1>}, {transform_indices = @transform_4, window_bounds = array<i64: 2, 32>}, {transform_indices = @transform_5, window_bounds = array<i64: 2, 16>}]} {
    %c0 = arith.constant 0 : index
    %c0_0 = arith.constant 0 : index
    %c0_1 = arith.constant 0 : index
    %0 = vector.load %arg1[%c0, %c0_0, %c0_1] : memref<2x16x32xf32, #tpu.memory_space<vmem>>, vector<2x16x32xf32>
    %c0_2 = arith.constant 0 : index
    %c0_3 = arith.constant 0 : index
    %c0_4 = arith.constant 0 : index
    %1 = vector.load %arg2[%c0_2, %c0_3, %c0_4] : memref<1x1x32xf32, #tpu.memory_space<vmem>>, vector<1x1x32xf32>
    %c0_5 = arith.constant 0 : index
    %2 = memref.load %arg4[%c0_5] : memref<1xf32, #tpu.memory_space<smem>>
    %c0_6 = arith.constant 0 : index
    %c0_7 = arith.constant 0 : index
    %3 = vector.load %arg3[%c0_6, %c0_7] : memref<2x16xf32, #tpu.memory_space<vmem>>, vector<2x16xf32>
    %4 = vector.broadcast %1 : vector<1x1x32xf32> to vector<2x16x32xf32>
    %5 = arith.mulf %0, %4 : vector<2x16x32xf32>
    %cst = arith.constant dense<0.000000e+00> : vector<2x16xf32>
    %6 = vector.multi_reduction <add>, %5, %cst [2] : vector<2x16x32xf32> to vector<2x16xf32>
    %7 = vector.broadcast %2 : f32 to vector<2x16xf32>
    %8 = arith.addf %6, %7 : vector<2x16xf32>
    %cst_8 = arith.constant 0.000000e+00 : f32
    %9 = vector.broadcast %cst_8 : f32 to vector<2x16xf32>
    %10 = arith.cmpf ogt, %3, %9 : vector<2x16xf32>
    %cst_9 = arith.constant 0xFF800000 : f32
    %11 = vector.broadcast %cst_9 : f32 to vector<2x16xf32>
    %12 = arith.select %10, %8, %11 : vector<2x16xi1>, vector<2x16xf32>
    %cst_10 = arith.constant dense<0xFF800000> : vector<2xf32>
    %13 = vector.multi_reduction <maximumf>, %12, %cst_10 [1] : vector<2x16xf32> to vector<2xf32>
    %14 = vector.shape_cast %13 : vector<2xf32> to vector<2x1xf32>
    %15 = vector.broadcast %14 : vector<2x1xf32> to vector<2x16xf32>
    %16 = arith.subf %12, %15 : vector<2x16xf32>
    %17 = math.exp %16 : vector<2x16xf32>
    %cst_11 = arith.constant dense<0.000000e+00> : vector<2xf32>
    %18 = vector.multi_reduction <add>, %17, %cst_11 [1] : vector<2x16xf32> to vector<2xf32>
    %19 = vector.shape_cast %18 : vector<2xf32> to vector<2x1xf32>
    %20 = tpu.reciprocal %19 : vector<2x1xf32> -> vector<2x1xf32>
    %21 = vector.broadcast %20 : vector<2x1xf32> to vector<2x16xf32>
    %22 = arith.mulf %17, %21 : vector<2x16xf32>
    %23 = vector.shape_cast %22 : vector<2x16xf32> to vector<2x16x1xf32>
    %24 = vector.broadcast %23 : vector<2x16x1xf32> to vector<2x16x32xf32>
    %25 = arith.mulf %0, %24 : vector<2x16x32xf32>
    %cst_12 = arith.constant dense<0.000000e+00> : vector<2x32xf32>
    %26 = vector.multi_reduction <add>, %25, %cst_12 [1] : vector<2x16x32xf32> to vector<2x32xf32>
    %c0_13 = arith.constant 0 : index
    %c0_14 = arith.constant 0 : index
    %27 = vector.load %arg5[%c0_13, %c0_14] : memref<2x32xf32, #tpu.memory_space<vmem>>, vector<2x32xf32>
    tpu.vector_store %arg5[%c0_13, %c0_14], %26 {strides = array<i32>} : memref<2x32xf32, #tpu.memory_space<vmem>>, vector<2x32xf32>,
    %c0_15 = arith.constant 0 : index
    %c0_16 = arith.constant 0 : index
    %28 = vector.load %arg6[%c0_15, %c0_16] : memref<2x16xf32, #tpu.memory_space<vmem>>, vector<2x16xf32>
    tpu.vector_store %arg6[%c0_15, %c0_16], %22 {strides = array<i32>} : memref<2x16xf32, #tpu.memory_space<vmem>>, vector<2x16xf32>,
    return
  }
  func.func @transform_0(%arg0: i32) -> (i32, i32, i32) {
    %c0_i32 = arith.constant 0 : i32
    %c0_i32_0 = arith.constant 0 : i32
    %c0_i32_1 = arith.constant 0 : i32
    return %arg0, %c0_i32, %c0_i32_0 : i32, i32, i32
  }
  func.func @transform_1(%arg0: i32) -> (i32, i32, i32) {
    %c0_i32 = arith.constant 0 : i32
    %c0_i32_0 = arith.constant 0 : i32
    %c0_i32_1 = arith.constant 0 : i32
    %c0_i32_2 = arith.constant 0 : i32
    return %c0_i32, %c0_i32_0, %c0_i32_1 : i32, i32, i32
  }
  func.func @transform_2(%arg0: i32) -> (i32, i32) {
    %c0_i32 = arith.constant 0 : i32
    %c0_i32_0 = arith.constant 0 : i32
    return %arg0, %c0_i32 : i32, i32
  }
  func.func @transform_3(%arg0: i32) -> i32 {
    %c0_i32 = arith.constant 0 : i32
    %c0_i32_0 = arith.constant 0 : i32
    return %c0_i32 : i32
  }
  func.func @transform_4(%arg0: i32) -> (i32, i32) {
    %c0_i32 = arith.constant 0 : i32
    %c0_i32_0 = arith.constant 0 : i32
    return %arg0, %c0_i32 : i32, i32
  }
  func.func @transform_5(%arg0: i32) -> (i32, i32) {
    %c0_i32 = arith.constant 0 : i32
    %c0_i32_0 = arith.constant 0 : i32
    return %arg0, %c0_i32 : i32, i32
  }
}

</mosaic_0001>

<bundles_post_ra>
// kernel: tpu_custom_call.1
= control target key start
LH: loop header
LB: loop body
LE: loop exit
PB: predicated region body
PF: predicated region fallthrough
CT: control target
= control target key end

     0   :  { %12 = vsyncpa [#allocation4], 0  ;;  %s385_s0 = inlined_call_operand.hbm [shape: f32[2,16,32], index: 0, kind: input, shape index: {}]   ;;  %s386_s1 = inlined_call_operand.vmem [shape: f32[1,1,32], index: 1, kind: input, shape index: {}]   ;;  %s387_s2 = inlined_call_operand.vmem [shape: f32[2,16], index: 2, kind: input, shape index: {}]   ;;  %s388_s3 = inlined_call_operand.<no memory space> [shape: f32[1], index: 3, kind: input, shape index: {}]   ;;  %s389_s4 = inlined_call_operand.hbm [shape: f32[2,32], index: 4, kind: output, shape index: {0}]   ;;  %s390_s5 = inlined_call_operand.hbm [shape: f32[2,16], index: 5, kind: output, shape index: {1}]  }
   0x1   :  { %13 = vsyncpa [#allocation5], 0 }
   0x2   :  { %14 = vsyncpa [#allocation8], 0  ;;  %s276_s18 = smov [#allocation3]   ;;  %s204_s22 = scalar_lea.hbm %s385_s0, 512 }
   0x3   :  { %s20_s19 = sshll.u32 %s276_s18, 4  ;;  %p205_p0 = scmp.ne.s32.totalorder %s385_s0, %s204_s22  ;;  %s21_s19 = int_to_ptr.vmem [resolvable:$true] %s20_s19 }
   0x4   :  { %p208_p1 = scmp.lt.u32.totalorder %s204_s22, %s385_s0 }
   0x6   :  { %p210_p2 = pnand %p208_p1, %p205_p0 }
   0x8   :  { %213 = shalt.err (!%p210_p2)
}
   0x9   :  { %s214_s27 = scalar_lea.vmem %s21_s19, 512  ;;  %p219_p4 = scmp.lt.s32.totalorder %s21_s19, %s21_s19 }
   0xa   :  { %p215_p3 = scmp.ne.s32.totalorder %s21_s19, %s214_s27  ;;  %p220_p5 = scmp.lt.s32.totalorder %s214_s27, %s214_s27 }
   0xc   :  { %p221_p6 = por %p220_p5, %p219_p4 }
   0xe   :  { %p222_p7 = pnand %p221_p6, %p215_p3 }
  0x10   :  { %225 = shalt.err (!%p222_p7)
}
  0x11   :  { %s277_s28 = smov 128   ;;  %s278_s29 = smov 8  }
  0x12   :  { %26 = dma.hbm_to_vmem [thread:$0]  %s385_s0, 512, %s21_s19, [#allocation4], %s277_s28, %s277_s28, %s278_s29  }
  0x13   :  { %270 = dma.done.wait [#allocation4], 512  }
  0x14   :  { %271 = vsyncadd [#allocation4], 4294966784  ;;  %v323_v0 = vld [vmem:[#allocation3 + $0x10] sm:$0xff]  ;;  %v194_v1 = vld [vmem:[%s386_s1] ss:$0 sm:$0xff]  ;;  %vm53_vm0 = vcmask 261120   ;;  %v76_v13 = vlaneseq  ;;  %v66_v17 = vstv %s388_s3 }
  0x15   :  { %v328_v2 = vld [vmem:[#allocation3] sm:$0xff]  ;;  %v51_v3 = vmul.f32 %v194_v1, %v323_v0  ;;  %v332_v5 = vld [vmem:[#allocation3 + $0x18] sm:$0xff]  ;;  %v334_v6 = vld [vmem:[#allocation3 + $0x8] sm:$0xff]  ;;  %vm87_vm1 = vcmask 130112   ;;  %vm98_vm2 = vcmask 1041409   ;;  %vm102_vm4 = vcmask 123904  }
  0x16   :  { %v49_v4 = vmul.f32 %v194_v1, %v328_v2  ;;  %v52_v7 = vmul.f32 %v194_v1, %v332_v5  ;;  %v50_v8 = vmul.f32 %v194_v1, %v334_v6  ;;  %v77_v14 = vand.u32 127, %v76_v13  ;;  %v42_v28 = vld [vmem:[%s387_s2] sm:$0x3]  ;;  %s279_s2 = smov [#allocation7]  }
  0x17   :  { %v60_v9 = vsel %vm53_vm0, %v51_v3, 0.0  ;;  %v79_v15 = vshrl.u32 %v76_v13, 7  ;;  %vm71_vm3 = vcmp.gt.f32.partialorder %v42_v28, 0.0  ;;  %s181_s3 = sshll.u32 %s279_s2, 4  ;;  %s182_s3 = int_to_ptr.vmem [resolvable:$true] %s181_s3 }
  0x18   :  { %v54_v10 = vsel %vm53_vm0, %v49_v4, 0.0  ;;  %61 = vadd.xlane.f32.xlu1 %v60_v9  ;;  %v63_v11 = vsel %vm53_vm0, %v52_v7, 0.0  ;;  %v57_v12 = vsel %vm53_vm0, %v50_v8, 0.0  ;;  %v82_v16 = vadd.s32 4294967288, %v77_v14  ;;  %s226_s11 = scalar_lea.vmem %s182_s3, 32  ;;  %p231_p9 = scmp.lt.s32.totalorder %s182_s3, %s182_s3 }
  0x19   :  { %55 = vadd.xlane.f32.xlu0 %v54_v10  ;;  %v80_v20 = vsub.s32 %v77_v14, %v79_v15  ;;  %v116_v44 = vsub.s32 0, %v79_v15  ;;  %v127_v48 = vsub.s32 1, %v79_v15  ;;  %p227_p8 = scmp.ne.s32.totalorder %s182_s3, %s226_s11  ;;  %p232_p10 = scmp.lt.s32.totalorder %s226_s11, %s226_s11 }
  0x1a   :  { %v85_v23 = vsub.s32 %v82_v16, %v79_v15 }
  0x1b   :  { %p233_p11 = por %p232_p10, %p231_p9 }
  0x1c   :  { %64 = vadd.xlane.f32.xlu1 %v63_v11 }
  0x1d   :  { %58 = vadd.xlane.f32.xlu0 %v57_v12  ;;  %p234_p12 = pnand %p233_p11, %p227_p8 }
  0xa5   :  { %v62_v18 = vpop.xlane.xlu1 %61 }
  0xa6   :  { %v56_v19 = vpop.xlane.xlu0 %55  ;;  %v69_v21 = vadd.f32 %v66_v17, %v62_v18 }
  0xa7   :  { %v67_v22 = vadd.f32 %v66_v17, %v56_v19 }
  0xa8   :  { %v92_v29 = vrot.slane %v69_v21, %v80_v20 }
  0xa9   :  { %v65_v24 = vpop.xlane.xlu1 %64  ;;  %v81_v30 = vrot.slane %v67_v22, %v80_v20 }
  0xaa   :  { %v59_v25 = vpop.xlane.xlu0 %58  ;;  %v70_v26 = vadd.f32 %v66_v17, %v65_v24 }
  0xab   :  { %v68_v27 = vadd.f32 %v66_v17, %v59_v25 }
  0xac   :  { %v96_v31 = vrot.slane %v70_v26, %v85_v23 }
  0xad   :  { %v86_v32 = vrot.slane %v68_v27, %v85_v23 }
  0xae   :  { %v97_v34 = vsel %vm87_vm1, %v96_v31, %v92_v29 }
  0xaf   :  { %v88_v33 = vsel %vm87_vm1, %v86_v32, %v81_v30 }
  0xb0   :  { %v99_v35 = vsel %vm98_vm2, %v97_v34, %v88_v33 }
  0xb1   :  { %v101_v36 = vsel %vm71_vm3, %v99_v35, -inf }
  0xb2   :  { %v103_v37 = vsel %vm102_vm4, %v101_v36, -inf }
  0xb3   :  { %104 = vmax.xlane.f32.xlu0 %v103_v37 }
 0x140   :  { %v105_v38 = vpop.xlane.xlu0 %104 }
 0x141   :  { %v106_v39 = vsub.f32 %v101_v36, %v105_v38 }
 0x143   :  { %v107_v40 = vmul.f32 1.442695, %v106_v39 }
 0x145   :  { %200 = vpow2.f32 %v107_v40 }
 0x14f   :  { %v201_v41 = vpop.eup %200 }
 0x150   :  { %v109_v42 = vsel %vm102_vm4, %v201_v41, 0.0 }
 0x151   :  { %110 = vadd.xlane.f32.xlu1 %v109_v42 }
 0x1de   :  { %v111_v43 = vpop.xlane.xlu1 %110 }
 0x1df   :  { %202 = vrcp.f32 %v111_v43 }
 0x1e9   :  { %v203_v45 = vpop.eup %202 }
 0x1ea   :  { %v113_v46 = vmul.f32 %v203_v45, %v201_v41 }
 0x1ec   :  { %v117_v47 = vrot.slane %v113_v46, %v116_v44  ;;  %164 = vst.msk [vmem:[#allocation7] sm:$0x3] %vm102_vm4, %v113_v46  ;;  %v128_v49 = vrot.slane %v113_v46, %v127_v48 }
 0x1ee   :  { %123 = vbcast.lane.b32.xlu1 %v117_v47, 264  ;;  %119 = vbcast.lane.b32.xlu0 %v117_v47, 256 }
 0x1f2   :  { %130 = vbcast.lane.b32.xlu1 %v128_v49, 256 }
 0x1f6   :  { %134 = vbcast.lane.b32.xlu1 %v128_v49, 264 }
 0x1f7   :  { %237 = shalt.err (!%p234_p12)
}
 0x1f8   :  { %s238_s14 = scalar_lea.hbm %s390_s5, 32 }
 0x1f9   :  { %p239_p13 = scmp.ne.s32.totalorder %s390_s5, %s238_s14  ;;  %p242_p0 = scmp.lt.u32.totalorder %s238_s14, %s390_s5 }
 0x1fb   :  { %p244_p1 = pnand %p242_p0, %p239_p13 }
 0x1fd   :  { %247 = shalt.err (!%p244_p1)
}
 0x1fe   :  { %184 = dma.vmem_to_hbm [thread:$0]  %s182_s3, 32, %s390_s5, [#allocation8]   ;;  %vm162_vm5 = vcmask 254976  }
 0x1ff   :  { %s280_s5 = smov [#allocation6]  }
 0x200   :  { %s171_s21 = sshll.u32 %s280_s5, 4  ;;  %s172_s21 = int_to_ptr.vmem [resolvable:$true] %s171_s21 }
 0x201   :  { %s248_s22 = scalar_lea.vmem %s172_s21, 32  ;;  %p253_p3 = scmp.lt.s32.totalorder %s172_s21, %s172_s21 }
 0x202   :  { %p249_p2 = scmp.ne.s32.totalorder %s172_s21, %s248_s22  ;;  %p254_p4 = scmp.lt.s32.totalorder %s248_s22, %s248_s22 }
 0x204   :  { %p255_p5 = por %p254_p4, %p253_p3 }
 0x206   :  { %p256_p6 = pnand %p255_p5, %p249_p2 }
 0x260   :  { %v124_v50 = vpop.permute.xlu1 %123  ;;  %v120_v51 = vpop.permute.xlu0 %119 }
 0x261   :  { %v137_v52 = vmul.f32 %v124_v50, %v334_v6  ;;  %v136_v53 = vmul.f32 %v120_v51, %v328_v2 }
 0x263   :  { %v141_v54 = vsel %vm53_vm0, %v137_v52, 0.0  ;;  %v140_v55 = vsel %vm53_vm0, %v136_v53, 0.0 }
 0x264   :  { %v142_v56 = vadd.f32 %v141_v54, %v140_v55  ;;  %v131_v57 = vpop.permute.xlu1 %130 }
 0x265   :  { %v138_v59 = vmul.f32 %v131_v57, %v323_v0 }
 0x266   :  { %v143_v58 = vrot.slane %v142_v56, 4 }
 0x267   :  { %v149_v63 = vsel %vm53_vm0, %v138_v59, 0.0 }
 0x268   :  { %v144_v60 = vadd.f32 %v143_v58, %v142_v56  ;;  %v135_v61 = vpop.permute.xlu1 %134 }
 0x269   :  { %v139_v62 = vmul.f32 %v135_v61, %v332_v5 }
 0x26a   :  { %v145_v3 = vrot.slane %v144_v60, 2 }
 0x26b   :  { %v150_v1 = vsel %vm53_vm0, %v139_v62, 0.0 }
 0x26c   :  { %v151_v4 = vadd.f32 %v150_v1, %v149_v63  ;;  %v146_v6 = vadd.f32 %v145_v3, %v144_v60 }
 0x26e   :  { %v152_v2 = vrot.slane %v151_v4, 4  ;;  %v147_v9 = vrot.slane %v146_v6, 1 }
 0x270   :  { %v153_v7 = vadd.f32 %v152_v2, %v151_v4  ;;  %v148_v0 = vadd.f32 %v147_v9, %v146_v6 }
 0x272   :  { %v154_v8 = vrot.slane %v153_v7, 2 }
 0x274   :  { %v155_v10 = vadd.f32 %v154_v8, %v153_v7 }
 0x276   :  { %v156_v11 = vrot.slane %v155_v10, 1 }
 0x278   :  { %v157_v12 = vadd.f32 %v156_v11, %v155_v10 }
 0x27a   :  { %v160_v5 = vsel %vm98_vm2, %v157_v12, %v148_v0 }
 0x27b   :  { %163 = vst.msk [vmem:[#allocation6] sm:$0x3] %vm162_vm5, %v160_v5 }
 0x27c   :  { %259 = shalt.err (!%p256_p6)
}
 0x27d   :  { %s260_s25 = scalar_lea.hbm %s389_s4, 32 }
 0x27e   :  { %p261_p7 = scmp.ne.s32.totalorder %s389_s4, %s260_s25  ;;  %p264_p8 = scmp.lt.u32.totalorder %s260_s25, %s389_s4 }
 0x280   :  { %p266_p9 = pnand %p264_p8, %p261_p7 }
 0x282   :  { %269 = shalt.err (!%p266_p9)
}
 0x283   :  { %174 = dma.vmem_to_hbm [thread:$0]  %s172_s21, 32, %s389_s4, [#allocation5]  }
 0x284   :  { %272 = dma.done.wait [#allocation5], 32  }
 0x285   :  { %273 = vsyncadd [#allocation5], 4294967264 }
 0x286   :  { %274 = dma.done.wait [#allocation8], 32  }
 0x287   :  { %275 = vsyncadd [#allocation8], 4294967264 }
 0x288   :  { %191 = vsyncpa [#allocation4], 1 }
 0x289   :  { %192 = vsyncpa [#allocation5], 1 }
 0x28a   :  { %193 = vsyncpa [#allocation8], 1 }

</bundles_post_ra>
